<compile_context>
chip_gen: v7x
topology: tpu7x:2x2x1
jax: 0.10.0
libtpu: 0.0.40
codegen_flags: <defaults>
</compile_context>

<pallas_src>
import functools
import math

import jax
import jax.numpy as jnp
from jax.experimental import pallas as pl
from jax.experimental.pallas import tpu as pltpu

_EPS = 1e-6                         # _BaseLoss eps buffer
_CONST = -0.5 * math.log(math.pi)   # StudentLoss const buffer (-0.5*log(pi))
# Constant part of the fused expression: const - (half_nu1p - half_nu).
_CONST2 = _CONST - 0.5 + _EPS

# --- Lanczos (g=5, 7 terms) rewritten as a rational P(z)/Q(z) ----------------
_LANCZOS_G = 5.0
_LANCZOS_COEFS = (
    1.000000000190015,
    76.18009172947146,
    -86.50532032941677,
    24.01409824083091,
    -1.231739572450155,
    0.1208650973866179e-2,
    -0.5395239384953e-5,
)
_LANCZOS_N = len(_LANCZOS_COEFS) - 1   # 6


def _poly_mul(a, b):
    out = [0.0] * (len(a) + len(b) - 1)
    for i, ai in enumerate(a):
        for j, bj in enumerate(b):
            out[i + j] += ai * bj
    return out


def _rational_lanczos():
    """Rewrite A(z) = c0 + sum_k c_k/(z+k) as P(z)/Q(z); coeffs in float64."""
    q = [1.0]
    for k in range(1, _LANCZOS_N + 1):
        q = _poly_mul(q, [float(k), 1.0])
    p = [_LANCZOS_COEFS[0] * c for c in q]
    for i in range(1, _LANCZOS_N + 1):
        r = [1.0]
        for k in range(1, _LANCZOS_N + 1):
            if k != i:
                r = _poly_mul(r, [float(k), 1.0])
        r = r + [0.0] * (len(q) - len(r))
        p = [pc + _LANCZOS_COEFS[i] * rc for pc, rc in zip(p, r)]
    return tuple(p), tuple(q)


_LANCZOS_P, _LANCZOS_Q = _rational_lanczos()


def _horner_py(z, coeffs):
    acc = coeffs[-1]
    for c in coeffs[-2::-1]:
        acc = acc * z + c
    return acc


# Import-time sanity check #1: the rational rewrite equals the partial
# fraction series (pure Python doubles).
for _z in (-0.5, 0.05, 0.5, 1.0, 2.5, 7.0, 40.0, 300.0):
    _s = _LANCZOS_COEFS[0] + sum(
        c / (_z + k) for k, c in enumerate(_LANCZOS_COEFS[1:], start=1))
    _r = _horner_py(_z, _LANCZOS_P) / _horner_py(_z, _LANCZOS_Q)
    assert abs(_r - _s) <= 1e-8 * abs(_s), (_z, _r, _s)


def _ref_negll_py(df, loc, scale, y):
    half_nu = 0.5 * df + _EPS
    half_nu1p = 0.5 * (df + 1.0)
    tau2nu = scale * scale * df + _EPS
    return -(_CONST + math.lgamma(half_nu1p) - math.lgamma(half_nu)
             - 0.5 * math.log(tau2nu)
             - half_nu1p * math.log1p((y - loc) ** 2 / tau2nu))


def _fused_negll_py(df, loc, scale, y):
    """Pure-Python (double) mirror of the kernel's fused expression."""
    hd = 0.5 * df
    tau2nu = scale * scale * df + _EPS
    d2 = (y - loc) ** 2
    z1 = hd - 0.5
    z2 = hd + (_EPS - 1.0)
    t1 = hd + _LANCZOS_G
    t2 = hd + (_EPS + _LANCZOS_G - 0.5)
    ratio = ((_horner_py(z1, _LANCZOS_P) / _horner_py(z2, _LANCZOS_P))
             * (_horner_py(z2, _LANCZOS_Q) / _horner_py(z1, _LANCZOS_Q)))
    return -(_CONST2
             + hd * math.log(t1 * tau2nu)
             - (hd + (_EPS - 0.5)) * math.log(t2)
             + math.log(ratio)
             - (hd + 0.5) * math.log(tau2nu + d2))


# Import-time sanity check #2: the fused lgamma-difference / merged-log
# formula matches the original torch formula (pure Python doubles).
for _df in (1.0, 1.7, 4.5, 30.0, 300.0, 3000.0):
    for _sc in (0.2, 1.0, 3.0):
        for _d in (0.0, 0.7, 5.0):
            _f = _fused_negll_py(_df, 0.0, _sc, _d)
            _r = _ref_negll_py(_df, 0.0, _sc, _d)
            assert abs(_f - _r) <= 1e-6 * max(1.0, abs(_r)), (_df, _sc, _d, _f, _r)


# --- kernel-side helpers -------------------------------------------------------
def _recip(x):
    """Approximate reciprocal (1 EUP op) + one Newton step (~f32 accurate)."""
    r = pl.reciprocal(x, approx=True)
    return r * (2.0 - x * r)


def _horner(z, coeffs):
    acc = jnp.full_like(z, coeffs[-1])
    for c in coeffs[-2::-1]:
        acc = acc * z + c
    return acc


def _negll(df, loc, scale, y_true):
    """Point-wise Student's t negative log-likelihood (fused form).

    Algebraically identical to the torch reference
        -(const + lgamma(hn1p) - lgamma(hn) - 0.5*log(tau2nu)
          - hn1p*log1p((y-loc)^2/tau2nu))
    but only 4 logs + 2 approx-reciprocals hit the EUP per element.
    NOTE: the log1p -> log-difference merge loses a little accuracy when
    (y-loc)^2 << tau2nu; well inside the 1e-3 tolerance targeted here.
    """
    hd = 0.5 * df                           # = half_nu1p - 0.5 = half_nu - eps
    tau2nu = scale * scale * df + _EPS
    diff = y_true - loc
    # Lanczos arguments for x1 = hd + 0.5 and x2 = hd + eps.
    z1 = hd - 0.5
    z2 = hd + (_EPS - 1.0)
    t1 = hd + _LANCZOS_G                    # x1 + g - 0.5
    t2 = hd + (_EPS + _LANCZOS_G - 0.5)     # x2 + g - 0.5
    p1 = _horner(z1, _LANCZOS_P)
    q1 = _horner(z1, _LANCZOS_Q)
    p2 = _horner(z2, _LANCZOS_P)
    q2 = _horner(z2, _LANCZOS_Q)
    # A(z1)/A(z2) as (P1/P2)*(Q2/Q1): two O(1)-ish ratios instead of one
    # (P1*Q2)/(P2*Q1) whose z^12 intermediates would overflow f32 near
    # df ~ 3e3.  Costs one extra approx-recip but stays finite to df ~ 5e6.
    ratio = (p1 * _recip(p2)) * (q2 * _recip(q1))
    return -(_CONST2
             + hd * jnp.log(t1 * tau2nu)
             - (hd + (_EPS - 0.5)) * jnp.log(t2)
             + jnp.log(ratio)
             - (hd + 0.5) * jnp.log(tau2nu + diff * diff))


# --- kernels -------------------------------------------------------------------
def _student_sum_kernel(df_ref, loc_ref, scale_ref, y_ref, out_ref, acc_ref, *,
                        tile_rows, lanes, n_inner, n_virtual, mask_from_block,
                        full_rows, lane_rem):
    j = pl.program_id(1)
    block = pl.program_id(0) * n_inner + j          # logical block index
    n_chunks = tile_rows // 8

    @pl.when(j == 0)
    def _():
        acc_ref[...] = jnp.zeros_like(acc_ref)

    if mask_from_block > 0:
        # Hot path: blocks guaranteed free of padding -> no masking at all.
        @pl.when(block < mask_from_block)
        def _():
            n_acc = 4 if n_chunks % 4 == 0 else (2 if n_chunks % 2 == 0 else 1)
            zero = jnp.zeros((8, lanes), jnp.float32)
            accs = [zero] * n_acc
            # Fully-unrolled chunked accumulation (equivalent to a
            # lax.fori_loop(..., unroll=True)): negll stays vreg-resident
            # instead of becoming a (tile_rows, 128) VMEM temp, and the
            # independent accumulator chains give the VPU some ILP.
            for c in range(n_chunks):
                sl = pl.ds(c * 8, 8)
                accs[c % n_acc] = accs[c % n_acc] + _negll(
                    df_ref[sl, :], loc_ref[sl, :], scale_ref[sl, :], y_ref[sl, :])
            while len(accs) > 1:
                accs = [accs[k] + accs[k + 1] for k in range(0, len(accs), 2)]
            acc_ref[...] += accs[0]

    if mask_from_block < n_virtual:
        # Tail path: the (at most two) blocks that touch padding / ghost
        # blocks.  Row/lane-based mask (no int32 flat-index overflow).
        # Kept rolled: it runs rarely, so code size beats speed here.
        @pl.when(block >= mask_from_block)
        def _():
            def body(k, acc):
                start = pl.multiple_of(k * 8, 8)
                sl = pl.ds(start, 8)
                v = _negll(df_ref[sl, :], loc_ref[sl, :],
                           scale_ref[sl, :], y_ref[sl, :])
                row = (block * tile_rows + k * 8
                       + jax.lax.broadcasted_iota(jnp.int32, (8, lanes), 0))
                lane = jax.lax.broadcasted_iota(jnp.int32, (8, lanes), 1)
                valid = (row < full_rows) | ((row == full_rows)
                                             & (lane < lane_rem))
                return acc + jnp.where(valid, v, 0.0)

            acc_ref[...] += jax.lax.fori_loop(
                0, n_chunks, body, jnp.zeros((8, lanes), jnp.float32))

    @pl.when(j == n_inner - 1)
    def _():
        out_ref[0] = acc_ref[...]


def _student_none_kernel(df_ref, loc_ref, scale_ref, y_ref, out_ref, *,
                         tile_rows):
    # Chunked compute+store: no full-tile negll temp.
    for c in range(tile_rows // 8):
        sl = pl.ds(c * 8, 8)
        out_ref[sl, :] = _negll(df_ref[sl, :], loc_ref[sl, :],
                                scale_ref[sl, :], y_ref[sl, :])


# --- wrapper -------------------------------------------------------------------
def _round_up(x, m):
    return ((x + m - 1) // m) * m


def student_loss(df, loc, scale, y_true, reduction="mean", *, tile_rows=512):
    """Pallas TPU implementation of swak.pt.losses.StudentLoss.forward."""
    lanes = 128
    orig_shape = jnp.shape(df)
    n = math.prod(orig_shape)
    if n == 0:
        raise ValueError("StudentLoss: empty input")

    # Flatten row-major, pad only to a multiple of 8*128 = 1024 elements.
    # The pad-copy disappears entirely whenever n is already 1024-aligned.
    rows = _round_up(pl.cdiv(n, lanes), 8)
    padded = rows * lanes
    tr = max(8, (min(int(tile_rows), rows) // 8) * 8)   # block rows (mult. of 8)
    n_blocks = pl.cdiv(rows, tr)

    def prep(x, fill):
        xf = jnp.ravel(jnp.asarray(x, jnp.float32))
        if padded > n:
            xf = jnp.concatenate(
                [xf, jnp.full((padded - n,), fill, jnp.float32)])
        return xf.reshape(rows, lanes)

    dff = prep(df, 1.0)        # benign pad values (masked out of reductions)
    locf = prep(loc, 0.0)
    scalef = prep(scale, 1.0)
    yf = prep(y_true, 0.0)

    # Advisory cost hint: ~80 VALU flops, 6 transcendentals, 16 B in / elem.
    cost = pl.CostEstimate(
        flops=85 * padded,
        transcendentals=6 * padded,
        bytes_accessed=4 * 4 * padded,
    )

    if reduction in ("mean", "sum"):
        # Outer axis is always 2 when possible so both v7x TensorCores get
        # work; harmless (sequential) on single-core v5e/v6e.
        # TODO(synk): verify plain "parallel" actually shards across the two
        # v7x TCs in a trace; if not, switch the outer axis to CORE_PARALLEL.
        n_outer = 2 if n_blocks >= 2 else 1
        n_inner = pl.cdiv(n_blocks, n_outer)
        n_virtual = n_outer * n_inner           # >= n_blocks (ghosts masked)
        mask_from_block = n // (tr * lanes)     # first block touching padding
        full_rows = n // lanes                  # fully-valid rows
        lane_rem = n % lanes                    # valid lanes in row `full_rows`

        def idx_map(i, j):
            # Clamp ghost blocks (only when n_blocks is odd) onto real data;
            # their contribution is masked to zero inside the kernel.
            return (jnp.minimum(i * n_inner + j, n_blocks - 1), 0)

        in_spec = pl.BlockSpec((tr, lanes), idx_map)
        kernel = functools.partial(
            _student_sum_kernel, tile_rows=tr, lanes=lanes, n_inner=n_inner,
            n_virtual=n_virtual, mask_from_block=mask_from_block,
            full_rows=full_rows, lane_rem=lane_rem)
        partials = pl.pallas_call(
            kernel,
            out_shape=jax.ShapeDtypeStruct((n_outer, 8, lanes), jnp.float32),
            grid=(n_outer, n_inner),
            in_specs=[in_spec] * 4,
            out_specs=pl.BlockSpec((1, 8, lanes), lambda i, j: (i, 0, 0)),
            scratch_shapes=[pltpu.VMEM((8, lanes), jnp.float32)],
            compiler_params=pltpu.CompilerParams(
                dimension_semantics=("parallel", "arbitrary")),
            cost_estimate=cost,
        )(dff, locf, scalef, yf)
        total = jnp.sum(partials)
        return total / n if reduction == "mean" else total

    if reduction == "none":
        in_spec = pl.BlockSpec((tr, lanes), lambda i: (i, 0))
        out = pl.pallas_call(
            functools.partial(_student_none_kernel, tile_rows=tr),
            out_shape=jax.ShapeDtypeStruct((rows, lanes), jnp.float32),
            grid=(n_blocks,),
            in_specs=[in_spec] * 4,
            out_specs=pl.BlockSpec((tr, lanes), lambda i: (i, 0)),
            compiler_params=pltpu.CompilerParams(
                dimension_semantics=("parallel",)),
            cost_estimate=cost,
        )(dff, locf, scalef, yf)
        return out.reshape(-1)[:n].reshape(orig_shape)

    raise ValueError('"reduction" must be one of "mean", "sum", or "none"!')


# --- pure-JAX reference (sanity check) -----------------------------------------
def _student_loss_ref(df, loc, scale, y_true, reduction="mean"):
    df = jnp.asarray(df, jnp.float32)
    loc = jnp.asarray(loc, jnp.float32)
    scale = jnp.asarray(scale, jnp.float32)
    y_true = jnp.asarray(y_true, jnp.float32)
    half_nu = 0.5 * df + _EPS
    half_nu1p = 0.5 * (df + 1.0)
    tau2nu = scale ** 2 * df + _EPS
    negll = -(
        _CONST
        + jax.scipy.special.gammaln(half_nu1p)
        - jax.scipy.special.gammaln(half_nu)
        - 0.5 * jnp.log(tau2nu)
        - half_nu1p * jnp.log1p((y_true - loc) ** 2 / tau2nu)
    )
    if reduction == "mean":
        return jnp.mean(negll)
    if reduction == "sum":
        return jnp.sum(negll)
    return negll


if __name__ == "__main__":
    key = jax.random.PRNGKey(0)
    k_df, k_loc, k_scale, k_y = jax.random.split(key, 4)

    shape = (2, 4, 16, 16)          # 2048 elements (1024-aligned: no pad copy)
    df = jax.random.uniform(k_df, shape, jnp.float32, minval=1.0, maxval=5.0)
    loc = jax.random.normal(k_loc, shape, jnp.float32)
    scale = jax.random.uniform(k_scale, shape, jnp.float32, minval=0.5, maxval=2.0)
    y_true = loc + 0.5 * jax.random.normal(k_y, shape, jnp.float32)

    out_mean = jax.block_until_ready(student_loss(df, loc, scale, y_true, "mean"))
    ref_mean = jax.block_until_ready(_student_loss_ref(df, loc, scale, y_true, "mean"))
    assert jnp.isfinite(out_mean), "kernel produced non-finite loss"
    assert jnp.allclose(out_mean, ref_mean, rtol=2e-3, atol=2e-3), (out_mean, ref_mean)

    out_none = jax.block_until_ready(student_loss(df, loc, scale, y_true, "none"))
    ref_none = _student_loss_ref(df, loc, scale, y_true, "none")
    assert out_none.shape == shape
    assert jnp.allclose(out_none, ref_none, rtol=2e-3, atol=2e-3)

    # Ragged element count: exercises 1024-padding + the masked tail block.
    shape2 = (3, 7, 5)              # 105 elements
    k1, k2, k3, k4 = jax.random.split(jax.random.PRNGKey(1), 4)
    df2 = jax.random.uniform(k1, shape2, jnp.float32, minval=1.0, maxval=5.0)
    loc2 = jax.random.normal(k2, shape2, jnp.float32)
    scale2 = jax.random.uniform(k3, shape2, jnp.float32, minval=0.5, maxval=2.0)
    y2 = loc2 + 0.5 * jax.random.normal(k4, shape2, jnp.float32)

    out_sum = jax.block_until_ready(student_loss(df2, loc2, scale2, y2, "sum"))
    ref_sum = _student_loss_ref(df2, loc2, scale2, y2, "sum")
    assert jnp.allclose(out_sum, ref_sum, rtol=2e-3, atol=2e-3), (out_sum, ref_sum)

    # Multi-block reduction with an odd block count: exercises the hot
    # (mask-free) path, the masked partial tail block, the two-wide outer
    # "parallel" axis, and the clamped ghost block.
    shape3 = (5, 1000)              # 5000 elements
    k5, k6, k7, k8 = jax.random.split(jax.random.PRNGKey(2), 4)
    df3 = jax.random.uniform(k5, shape3, jnp.float32, minval=1.0, maxval=5.0)
    loc3 = jax.random.normal(k6, shape3, jnp.float32)
    scale3 = jax.random.uniform(k7, shape3, jnp.float32, minval=0.5, maxval=2.0)
    y3 = loc3 + 0.5 * jax.random.normal(k8, shape3, jnp.float32)

    out_mean3 = jax.block_until_ready(
        student_loss(df3, loc3, scale3, y3, "mean", tile_rows=16))
    ref_mean3 = _student_loss_ref(df3, loc3, scale3, y3, "mean")
    assert jnp.allclose(out_mean3, ref_mean3, rtol=2e-3, atol=2e-3), (out_mean3, ref_mean3)

    # TODO(synk): add an lgamma reflection/recurrence branch if df < 1 must
    # match torch.lgamma to tight tolerance (direct Lanczos is used for all
    # positive df here).
    print("KERNEL_OK")
</pallas_src>

<mosaic_0001>
module attributes {stable_mosaic.version = 11 : i64} {
  func.func @_student_sum_kernel(%arg0: i32, %arg1: i32, %arg2: memref<16x128xf32, #tpu.memory_space<vmem>>, %arg3: memref<16x128xf32, #tpu.memory_space<vmem>>, %arg4: memref<16x128xf32, #tpu.memory_space<vmem>>, %arg5: memref<16x128xf32, #tpu.memory_space<vmem>>, %arg6: memref<1x8x128xf32, #tpu.memory_space<vmem>>, %arg7: memref<8x128xf32, #tpu.memory_space<vmem>>) attributes {dimension_semantics = [#tpu.dimension_semantics<parallel>, #tpu.dimension_semantics<arbitrary>], iteration_bounds = array<i64: 1, 1>, scalar_prefetch = 0 : i64, scratch_operands = 1 : i64, tpu.core_type = #tpu.core_type<tc>, window_params = [{transform_indices = @transform_0, window_bounds = array<i64: 16, 128>}, {transform_indices = @transform_1, window_bounds = array<i64: 16, 128>}, {transform_indices = @transform_2, window_bounds = array<i64: 16, 128>}, {transform_indices = @transform_3, window_bounds = array<i64: 16, 128>}, {transform_indices = @transform_4, window_bounds = array<i64: 1, 8, 128>}]} {
    %c1_i32 = arith.constant 1 : i32
    %0 = arith.muli %arg0, %c1_i32 : i32
    %1 = arith.addi %0, %arg1 : i32
    %c0_i32 = arith.constant 0 : i32
    %2 = arith.cmpi eq, %arg1, %c0_i32 : i32
    %3 = arith.extui %2 : i1 to i32
    %c0_i32_0 = arith.constant 0 : i32
    %4 = arith.cmpi ne, %3, %c0_i32_0 : i32
    scf.if %4 {
      %cst = arith.constant 0.000000e+00 : f32
      %11 = vector.broadcast %cst : f32 to vector<8x128xf32>
      %c0 = arith.constant 0 : index
      %c0_5 = arith.constant 0 : index
      %12 = vector.load %arg7[%c0, %c0_5] : memref<8x128xf32, #tpu.memory_space<vmem>>, vector<8x128xf32>
      tpu.vector_store %arg7[%c0, %c0_5], %11 {strides = array<i32>} : memref<8x128xf32, #tpu.memory_space<vmem>>, vector<8x128xf32>,
    } else {
    }
    %c1_i32_1 = arith.constant 1 : i32
    %5 = arith.cmpi slt, %1, %c1_i32_1 : i32
    %6 = arith.extui %5 : i1 to i32
    %c0_i32_2 = arith.constant 0 : i32
    %7 = arith.cmpi ne, %6, %c0_i32_2 : i32
    scf.if %7 {
      %cst = arith.constant 0.000000e+00 : f32
      %11 = vector.broadcast %cst : f32 to vector<8x128xf32>
      %c0 = arith.constant 0 : index
      %c0_5 = arith.constant 0 : index
      %12 = vector.load %arg2[%c0, %c0_5] : memref<16x128xf32, #tpu.memory_space<vmem>>, vector<8x128xf32>
      %c0_6 = arith.constant 0 : index
      %c0_7 = arith.constant 0 : index
      %13 = vector.load %arg3[%c0_6, %c0_7] : memref<16x128xf32, #tpu.memory_space<vmem>>, vector<8x128xf32>
      %c0_8 = arith.constant 0 : index
      %c0_9 = arith.constant 0 : index
      %14 = vector.load %arg4[%c0_8, %c0_9] : memref<16x128xf32, #tpu.memory_space<vmem>>, vector<8x128xf32>
      %c0_10 = arith.constant 0 : index
      %c0_11 = arith.constant 0 : index
      %15 = vector.load %arg5[%c0_10, %c0_11] : memref<16x128xf32, #tpu.memory_space<vmem>>, vector<8x128xf32>
      %cst_12 = arith.constant 5.000000e-01 : f32
      %16 = vector.broadcast %cst_12 : f32 to vector<8x128xf32>
      %17 = arith.mulf %16, %12 : vector<8x128xf32>
      %18 = arith.mulf %14, %14 : vector<8x128xf32>
      %19 = arith.mulf %18, %12 : vector<8x128xf32>
      %cst_13 = arith.constant 9.99999997E-7 : f32
      %20 = vector.broadcast %cst_13 : f32 to vector<8x128xf32>
      %21 = arith.addf %19, %20 : vector<8x128xf32>
      %22 = arith.subf %15, %13 : vector<8x128xf32>
      %cst_14 = arith.constant 5.000000e-01 : f32
      %23 = vector.broadcast %cst_14 : f32 to vector<8x128xf32>
      %24 = arith.subf %17, %23 : vector<8x128xf32>
      %cst_15 = arith.constant -0.999998986 : f32
      %25 = vector.broadcast %cst_15 : f32 to vector<8x128xf32>
      %26 = arith.addf %17, %25 : vector<8x128xf32>
      %cst_16 = arith.constant 5.000000e+00 : f32
      %27 = vector.broadcast %cst_16 : f32 to vector<8x128xf32>
      %28 = arith.addf %17, %27 : vector<8x128xf32>
      %cst_17 = arith.constant 4.50000095 : f32
      %29 = vector.broadcast %cst_17 : f32 to vector<8x128xf32>
      %30 = arith.addf %17, %29 : vector<8x128xf32>
      %cst_18 = arith.constant 1.000000e+00 : f32
      %31 = vector.broadcast %cst_18 : f32 to vector<8x128xf32>
      %32 = arith.mulf %31, %24 : vector<8x128xf32>
      %cst_19 = arith.constant 33.4583321 : f32
      %33 = vector.broadcast %cst_19 : f32 to vector<8x128xf32>
      %34 = arith.addf %32, %33 : vector<8x128xf32>
      %35 = arith.mulf %34, %24 : vector<8x128xf32>
      %cst_20 = arith.constant 466.334198 : f32
      %36 = vector.broadcast %cst_20 : f32 to vector<8x128xf32>
      %37 = arith.addf %35, %36 : vector<8x128xf32>
      %38 = arith.mulf %37, %24 : vector<8x128xf32>
      %cst_21 = arith.constant 3465.70947 : f32
      %39 = vector.broadcast %cst_21 : f32 to vector<8x128xf32>
      %40 = arith.addf %38, %39 : vector<8x128xf32>
      %41 = arith.mulf %40, %24 : vector<8x128xf32>
      %cst_22 = arith.constant 14484.9141 : f32
      %42 = vector.broadcast %cst_22 : f32 to vector<8x128xf32>
      %43 = arith.addf %41, %42 : vector<8x128xf32>
      %44 = arith.mulf %43, %24 : vector<8x128xf32>
      %cst_23 = arith.constant 32281.0645 : f32
      %45 = vector.broadcast %cst_23 : f32 to vector<8x128xf32>
      %46 = arith.addf %44, %45 : vector<8x128xf32>
      %47 = arith.mulf %46, %24 : vector<8x128xf32>
      %cst_24 = arith.constant 29969.5938 : f32
      %48 = vector.broadcast %cst_24 : f32 to vector<8x128xf32>
      %49 = arith.addf %47, %48 : vector<8x128xf32>
      %cst_25 = arith.constant 1.000000e+00 : f32
      %50 = vector.broadcast %cst_25 : f32 to vector<8x128xf32>
      %51 = arith.mulf %50, %24 : vector<8x128xf32>
      %cst_26 = arith.constant 2.100000e+01 : f32
      %52 = vector.broadcast %cst_26 : f32 to vector<8x128xf32>
      %53 = arith.addf %51, %52 : vector<8x128xf32>
      %54 = arith.mulf %53, %24 : vector<8x128xf32>
      %cst_27 = arith.constant 1.750000e+02 : f32
      %55 = vector.broadcast %cst_27 : f32 to vector<8x128xf32>
      %56 = arith.addf %54, %55 : vector<8x128xf32>
      %57 = arith.mulf %56, %24 : vector<8x128xf32>
      %cst_28 = arith.constant 7.350000e+02 : f32
      %58 = vector.broadcast %cst_28 : f32 to vector<8x128xf32>
      %59 = arith.addf %57, %58 : vector<8x128xf32>
      %60 = arith.mulf %59, %24 : vector<8x128xf32>
      %cst_29 = arith.constant 1.624000e+03 : f32
      %61 = vector.broadcast %cst_29 : f32 to vector<8x128xf32>
      %62 = arith.addf %60, %61 : vector<8x128xf32>
      %63 = arith.mulf %62, %24 : vector<8x128xf32>
      %cst_30 = arith.constant 1.764000e+03 : f32
      %64 = vector.broadcast %cst_30 : f32 to vector<8x128xf32>
      %65 = arith.addf %63, %64 : vector<8x128xf32>
      %66 = arith.mulf %65, %24 : vector<8x128xf32>
      %cst_31 = arith.constant 7.200000e+02 : f32
      %67 = vector.broadcast %cst_31 : f32 to vector<8x128xf32>
      %68 = arith.addf %66, %67 : vector<8x128xf32>
      %cst_32 = arith.constant 1.000000e+00 : f32
      %69 = vector.broadcast %cst_32 : f32 to vector<8x128xf32>
      %70 = arith.mulf %69, %26 : vector<8x128xf32>
      %cst_33 = arith.constant 33.4583321 : f32
      %71 = vector.broadcast %cst_33 : f32 to vector<8x128xf32>
      %72 = arith.addf %70, %71 : vector<8x128xf32>
      %73 = arith.mulf %72, %26 : vector<8x128xf32>
      %cst_34 = arith.constant 466.334198 : f32
      %74 = vector.broadcast %cst_34 : f32 to vector<8x128xf32>
      %75 = arith.addf %73, %74 : vector<8x128xf32>
      %76 = arith.mulf %75, %26 : vector<8x128xf32>
      %cst_35 = arith.constant 3465.70947 : f32
      %77 = vector.broadcast %cst_35 : f32 to vector<8x128xf32>
      %78 = arith.addf %76, %77 : vector<8x128xf32>
      %79 = arith.mulf %78, %26 : vector<8x128xf32>
      %cst_36 = arith.constant 14484.9141 : f32
      %80 = vector.broadcast %cst_36 : f32 to vector<8x128xf32>
      %81 = arith.addf %79, %80 : vector<8x128xf32>
      %82 = arith.mulf %81, %26 : vector<8x128xf32>
      %cst_37 = arith.constant 32281.0645 : f32
      %83 = vector.broadcast %cst_37 : f32 to vector<8x128xf32>
      %84 = arith.addf %82, %83 : vector<8x128xf32>
      %85 = arith.mulf %84, %26 : vector<8x128xf32>
      %cst_38 = arith.constant 29969.5938 : f32
      %86 = vector.broadcast %cst_38 : f32 to vector<8x128xf32>
      %87 = arith.addf %85, %86 : vector<8x128xf32>
      %cst_39 = arith.constant 1.000000e+00 : f32
      %88 = vector.broadcast %cst_39 : f32 to vector<8x128xf32>
      %89 = arith.mulf %88, %26 : vector<8x128xf32>
      %cst_40 = arith.constant 2.100000e+01 : f32
      %90 = vector.broadcast %cst_40 : f32 to vector<8x128xf32>
      %91 = arith.addf %89, %90 : vector<8x128xf32>
      %92 = arith.mulf %91, %26 : vector<8x128xf32>
      %cst_41 = arith.constant 1.750000e+02 : f32
      %93 = vector.broadcast %cst_41 : f32 to vector<8x128xf32>
      %94 = arith.addf %92, %93 : vector<8x128xf32>
      %95 = arith.mulf %94, %26 : vector<8x128xf32>
      %cst_42 = arith.constant 7.350000e+02 : f32
      %96 = vector.broadcast %cst_42 : f32 to vector<8x128xf32>
      %97 = arith.addf %95, %96 : vector<8x128xf32>
      %98 = arith.mulf %97, %26 : vector<8x128xf32>
      %cst_43 = arith.constant 1.624000e+03 : f32
      %99 = vector.broadcast %cst_43 : f32 to vector<8x128xf32>
      %100 = arith.addf %98, %99 : vector<8x128xf32>
      %101 = arith.mulf %100, %26 : vector<8x128xf32>
      %cst_44 = arith.constant 1.764000e+03 : f32
      %102 = vector.broadcast %cst_44 : f32 to vector<8x128xf32>
      %103 = arith.addf %101, %102 : vector<8x128xf32>
      %104 = arith.mulf %103, %26 : vector<8x128xf32>
      %cst_45 = arith.constant 7.200000e+02 : f32
      %105 = vector.broadcast %cst_45 : f32 to vector<8x128xf32>
      %106 = arith.addf %104, %105 : vector<8x128xf32>
      %107 = tpu.reciprocal %87 {approx = true} : vector<8x128xf32> -> vector<8x128xf32>
      %108 = arith.mulf %87, %107 : vector<8x128xf32>
      %cst_46 = arith.constant 2.000000e+00 : f32
      %109 = vector.broadcast %cst_46 : f32 to vector<8x128xf32>
      %110 = arith.subf %109, %108 : vector<8x128xf32>
      %111 = arith.mulf %107, %110 : vector<8x128xf32>
      %112 = arith.mulf %49, %111 : vector<8x128xf32>
      %113 = tpu.reciprocal %68 {approx = true} : vector<8x128xf32> -> vector<8x128xf32>
      %114 = arith.mulf %68, %113 : vector<8x128xf32>
      %cst_47 = arith.constant 2.000000e+00 : f32
      %115 = vector.broadcast %cst_47 : f32 to vector<8x128xf32>
      %116 = arith.subf %115, %114 : vector<8x128xf32>
      %117 = arith.mulf %113, %116 : vector<8x128xf32>
      %118 = arith.mulf %106, %117 : vector<8x128xf32>
      %119 = arith.mulf %112, %118 : vector<8x128xf32>
      %120 = arith.mulf %28, %21 : vector<8x128xf32>
      %121 = math.log %120 : vector<8x128xf32>
      %122 = arith.mulf %17, %121 : vector<8x128xf32>
      %cst_48 = arith.constant -1.07236397 : f32
      %123 = vector.broadcast %cst_48 : f32 to vector<8x128xf32>
      %124 = arith.addf %123, %122 : vector<8x128xf32>
      %cst_49 = arith.constant -4.999990e-01 : f32
      %125 = vector.broadcast %cst_49 : f32 to vector<8x128xf32>
      %126 = arith.addf %17, %125 : vector<8x128xf32>
      %127 = math.log %30 : vector<8x128xf32>
      %128 = arith.mulf %126, %127 : vector<8x128xf32>
      %129 = arith.subf %124, %128 : vector<8x128xf32>
      %130 = math.log %119 : vector<8x128xf32>
      %131 = arith.addf %129, %130 : vector<8x128xf32>
      %cst_50 = arith.constant 5.000000e-01 : f32
      %132 = vector.broadcast %cst_50 : f32 to vector<8x128xf32>
      %133 = arith.addf %17, %132 : vector<8x128xf32>
      %134 = arith.mulf %22, %22 : vector<8x128xf32>
      %135 = arith.addf %21, %134 : vector<8x128xf32>
      %136 = math.log %135 : vector<8x128xf32>
      %137 = arith.mulf %133, %136 : vector<8x128xf32>
      %138 = arith.subf %131, %137 : vector<8x128xf32>
      %cst_51 = arith.constant 0.000000e+00 : f32
      %139 = vector.broadcast %cst_51 : f32 to vector<8x128xf32>
      %140 = arith.subf %139, %138 : vector<8x128xf32>
      %141 = arith.addf %11, %140 : vector<8x128xf32>
      %c8 = arith.constant 8 : index
      %c0_52 = arith.constant 0 : index
      %142 = vector.load %arg2[%c8, %c0_52] : memref<16x128xf32, #tpu.memory_space<vmem>>, vector<8x128xf32>
      %c8_53 = arith.constant 8 : index
      %c0_54 = arith.constant 0 : index
      %143 = vector.load %arg3[%c8_53, %c0_54] : memref<16x128xf32, #tpu.memory_space<vmem>>, vector<8x128xf32>
      %c8_55 = arith.constant 8 : index
      %c0_56 = arith.constant 0 : index
      %144 = vector.load %arg4[%c8_55, %c0_56] : memref<16x128xf32, #tpu.memory_space<vmem>>, vector<8x128xf32>
      %c8_57 = arith.constant 8 : index
      %c0_58 = arith.constant 0 : index
      %145 = vector.load %arg5[%c8_57, %c0_58] : memref<16x128xf32, #tpu.memory_space<vmem>>, vector<8x128xf32>
      %cst_59 = arith.constant 5.000000e-01 : f32
      %146 = vector.broadcast %cst_59 : f32 to vector<8x128xf32>
      %147 = arith.mulf %146, %142 : vector<8x128xf32>
      %148 = arith.mulf %144, %144 : vector<8x128xf32>
      %149 = arith.mulf %148, %142 : vector<8x128xf32>
      %cst_60 = arith.constant 9.99999997E-7 : f32
      %150 = vector.broadcast %cst_60 : f32 to vector<8x128xf32>
      %151 = arith.addf %149, %150 : vector<8x128xf32>
      %152 = arith.subf %145, %143 : vector<8x128xf32>
      %cst_61 = arith.constant 5.000000e-01 : f32
      %153 = vector.broadcast %cst_61 : f32 to vector<8x128xf32>
      %154 = arith.subf %147, %153 : vector<8x128xf32>
      %cst_62 = arith.constant -0.999998986 : f32
      %155 = vector.broadcast %cst_62 : f32 to vector<8x128xf32>
      %156 = arith.addf %147, %155 : vector<8x128xf32>
      %cst_63 = arith.constant 5.000000e+00 : f32
      %157 = vector.broadcast %cst_63 : f32 to vector<8x128xf32>
      %158 = arith.addf %147, %157 : vector<8x128xf32>
      %cst_64 = arith.constant 4.50000095 : f32
      %159 = vector.broadcast %cst_64 : f32 to vector<8x128xf32>
      %160 = arith.addf %147, %159 : vector<8x128xf32>
      %cst_65 = arith.constant 1.000000e+00 : f32
      %161 = vector.broadcast %cst_65 : f32 to vector<8x128xf32>
      %162 = arith.mulf %161, %154 : vector<8x128xf32>
      %cst_66 = arith.constant 33.4583321 : f32
      %163 = vector.broadcast %cst_66 : f32 to vector<8x128xf32>
      %164 = arith.addf %162, %163 : vector<8x128xf32>
      %165 = arith.mulf %164, %154 : vector<8x128xf32>
      %cst_67 = arith.constant 466.334198 : f32
      %166 = vector.broadcast %cst_67 : f32 to vector<8x128xf32>
      %167 = arith.addf %165, %166 : vector<8x128xf32>
      %168 = arith.mulf %167, %154 : vector<8x128xf32>
      %cst_68 = arith.constant 3465.70947 : f32
      %169 = vector.broadcast %cst_68 : f32 to vector<8x128xf32>
      %170 = arith.addf %168, %169 : vector<8x128xf32>
      %171 = arith.mulf %170, %154 : vector<8x128xf32>
      %cst_69 = arith.constant 14484.9141 : f32
      %172 = vector.broadcast %cst_69 : f32 to vector<8x128xf32>
      %173 = arith.addf %171, %172 : vector<8x128xf32>
      %174 = arith.mulf %173, %154 : vector<8x128xf32>
      %cst_70 = arith.constant 32281.0645 : f32
      %175 = vector.broadcast %cst_70 : f32 to vector<8x128xf32>
      %176 = arith.addf %174, %175 : vector<8x128xf32>
      %177 = arith.mulf %176, %154 : vector<8x128xf32>
      %cst_71 = arith.constant 29969.5938 : f32
      %178 = vector.broadcast %cst_71 : f32 to vector<8x128xf32>
      %179 = arith.addf %177, %178 : vector<8x128xf32>
      %cst_72 = arith.constant 1.000000e+00 : f32
      %180 = vector.broadcast %cst_72 : f32 to vector<8x128xf32>
      %181 = arith.mulf %180, %154 : vector<8x128xf32>
      %cst_73 = arith.constant 2.100000e+01 : f32
      %182 = vector.broadcast %cst_73 : f32 to vector<8x128xf32>
      %183 = arith.addf %181, %182 : vector<8x128xf32>
      %184 = arith.mulf %183, %154 : vector<8x128xf32>
      %cst_74 = arith.constant 1.750000e+02 : f32
      %185 = vector.broadcast %cst_74 : f32 to vector<8x128xf32>
      %186 = arith.addf %184, %185 : vector<8x128xf32>
      %187 = arith.mulf %186, %154 : vector<8x128xf32>
      %cst_75 = arith.constant 7.350000e+02 : f32
      %188 = vector.broadcast %cst_75 : f32 to vector<8x128xf32>
      %189 = arith.addf %187, %188 : vector<8x128xf32>
      %190 = arith.mulf %189, %154 : vector<8x128xf32>
      %cst_76 = arith.constant 1.624000e+03 : f32
      %191 = vector.broadcast %cst_76 : f32 to vector<8x128xf32>
      %192 = arith.addf %190, %191 : vector<8x128xf32>
      %193 = arith.mulf %192, %154 : vector<8x128xf32>
      %cst_77 = arith.constant 1.764000e+03 : f32
      %194 = vector.broadcast %cst_77 : f32 to vector<8x128xf32>
      %195 = arith.addf %193, %194 : vector<8x128xf32>
      %196 = arith.mulf %195, %154 : vector<8x128xf32>
      %cst_78 = arith.constant 7.200000e+02 : f32
      %197 = vector.broadcast %cst_78 : f32 to vector<8x128xf32>
      %198 = arith.addf %196, %197 : vector<8x128xf32>
      %cst_79 = arith.constant 1.000000e+00 : f32
      %199 = vector.broadcast %cst_79 : f32 to vector<8x128xf32>
      %200 = arith.mulf %199, %156 : vector<8x128xf32>
      %cst_80 = arith.constant 33.4583321 : f32
      %201 = vector.broadcast %cst_80 : f32 to vector<8x128xf32>
      %202 = arith.addf %200, %201 : vector<8x128xf32>
      %203 = arith.mulf %202, %156 : vector<8x128xf32>
      %cst_81 = arith.constant 466.334198 : f32
      %204 = vector.broadcast %cst_81 : f32 to vector<8x128xf32>
      %205 = arith.addf %203, %204 : vector<8x128xf32>
      %206 = arith.mulf %205, %156 : vector<8x128xf32>
      %cst_82 = arith.constant 3465.70947 : f32
      %207 = vector.broadcast %cst_82 : f32 to vector<8x128xf32>
      %208 = arith.addf %206, %207 : vector<8x128xf32>
      %209 = arith.mulf %208, %156 : vector<8x128xf32>
      %cst_83 = arith.constant 14484.9141 : f32
      %210 = vector.broadcast %cst_83 : f32 to vector<8x128xf32>
      %211 = arith.addf %209, %210 : vector<8x128xf32>
      %212 = arith.mulf %211, %156 : vector<8x128xf32>
      %cst_84 = arith.constant 32281.0645 : f32
      %213 = vector.broadcast %cst_84 : f32 to vector<8x128xf32>
      %214 = arith.addf %212, %213 : vector<8x128xf32>
      %215 = arith.mulf %214, %156 : vector<8x128xf32>
      %cst_85 = arith.constant 29969.5938 : f32
      %216 = vector.broadcast %cst_85 : f32 to vector<8x128xf32>
      %217 = arith.addf %215, %216 : vector<8x128xf32>
      %cst_86 = arith.constant 1.000000e+00 : f32
      %218 = vector.broadcast %cst_86 : f32 to vector<8x128xf32>
      %219 = arith.mulf %218, %156 : vector<8x128xf32>
      %cst_87 = arith.constant 2.100000e+01 : f32
      %220 = vector.broadcast %cst_87 : f32 to vector<8x128xf32>
      %221 = arith.addf %219, %220 : vector<8x128xf32>
      %222 = arith.mulf %221, %156 : vector<8x128xf32>
      %cst_88 = arith.constant 1.750000e+02 : f32
      %223 = vector.broadcast %cst_88 : f32 to vector<8x128xf32>
      %224 = arith.addf %222, %223 : vector<8x128xf32>
      %225 = arith.mulf %224, %156 : vector<8x128xf32>
      %cst_89 = arith.constant 7.350000e+02 : f32
      %226 = vector.broadcast %cst_89 : f32 to vector<8x128xf32>
      %227 = arith.addf %225, %226 : vector<8x128xf32>
      %228 = arith.mulf %227, %156 : vector<8x128xf32>
      %cst_90 = arith.constant 1.624000e+03 : f32
      %229 = vector.broadcast %cst_90 : f32 to vector<8x128xf32>
      %230 = arith.addf %228, %229 : vector<8x128xf32>
      %231 = arith.mulf %230, %156 : vector<8x128xf32>
      %cst_91 = arith.constant 1.764000e+03 : f32
      %232 = vector.broadcast %cst_91 : f32 to vector<8x128xf32>
      %233 = arith.addf %231, %232 : vector<8x128xf32>
      %234 = arith.mulf %233, %156 : vector<8x128xf32>
      %cst_92 = arith.constant 7.200000e+02 : f32
      %235 = vector.broadcast %cst_92 : f32 to vector<8x128xf32>
      %236 = arith.addf %234, %235 : vector<8x128xf32>
      %237 = tpu.reciprocal %217 {approx = true} : vector<8x128xf32> -> vector<8x128xf32>
      %238 = arith.mulf %217, %237 : vector<8x128xf32>
      %cst_93 = arith.constant 2.000000e+00 : f32
      %239 = vector.broadcast %cst_93 : f32 to vector<8x128xf32>
      %240 = arith.subf %239, %238 : vector<8x128xf32>
      %241 = arith.mulf %237, %240 : vector<8x128xf32>
      %242 = arith.mulf %179, %241 : vector<8x128xf32>
      %243 = tpu.reciprocal %198 {approx = true} : vector<8x128xf32> -> vector<8x128xf32>
      %244 = arith.mulf %198, %243 : vector<8x128xf32>
      %cst_94 = arith.constant 2.000000e+00 : f32
      %245 = vector.broadcast %cst_94 : f32 to vector<8x128xf32>
      %246 = arith.subf %245, %244 : vector<8x128xf32>
      %247 = arith.mulf %243, %246 : vector<8x128xf32>
      %248 = arith.mulf %236, %247 : vector<8x128xf32>
      %249 = arith.mulf %242, %248 : vector<8x128xf32>
      %250 = arith.mulf %158, %151 : vector<8x128xf32>
      %251 = math.log %250 : vector<8x128xf32>
      %252 = arith.mulf %147, %251 : vector<8x128xf32>
      %cst_95 = arith.constant -1.07236397 : f32
      %253 = vector.broadcast %cst_95 : f32 to vector<8x128xf32>
      %254 = arith.addf %253, %252 : vector<8x128xf32>
      %cst_96 = arith.constant -4.999990e-01 : f32
      %255 = vector.broadcast %cst_96 : f32 to vector<8x128xf32>
      %256 = arith.addf %147, %255 : vector<8x128xf32>
      %257 = math.log %160 : vector<8x128xf32>
      %258 = arith.mulf %256, %257 : vector<8x128xf32>
      %259 = arith.subf %254, %258 : vector<8x128xf32>
      %260 = math.log %249 : vector<8x128xf32>
      %261 = arith.addf %259, %260 : vector<8x128xf32>
      %cst_97 = arith.constant 5.000000e-01 : f32
      %262 = vector.broadcast %cst_97 : f32 to vector<8x128xf32>
      %263 = arith.addf %147, %262 : vector<8x128xf32>
      %264 = arith.mulf %152, %152 : vector<8x128xf32>
      %265 = arith.addf %151, %264 : vector<8x128xf32>
      %266 = math.log %265 : vector<8x128xf32>
      %267 = arith.mulf %263, %266 : vector<8x128xf32>
      %268 = arith.subf %261, %267 : vector<8x128xf32>
      %cst_98 = arith.constant 0.000000e+00 : f32
      %269 = vector.broadcast %cst_98 : f32 to vector<8x128xf32>
      %270 = arith.subf %269, %268 : vector<8x128xf32>
      %271 = arith.addf %11, %270 : vector<8x128xf32>
      %272 = arith.addf %141, %271 : vector<8x128xf32>
      %c0_99 = arith.constant 0 : index
      %c0_100 = arith.constant 0 : index
      %273 = vector.load %arg7[%c0_99, %c0_100] : memref<8x128xf32, #tpu.memory_space<vmem>>, vector<8x128xf32>
      %274 = arith.addf %273, %272 : vector<8x128xf32>
      %c0_101 = arith.constant 0 : index
      %c0_102 = arith.constant 0 : index
      %275 = vector.load %arg7[%c0_101, %c0_102] : memref<8x128xf32, #tpu.memory_space<vmem>>, vector<8x128xf32>
      tpu.vector_store %arg7[%c0_101, %c0_102], %274 {strides = array<i32>} : memref<8x128xf32, #tpu.memory_space<vmem>>, vector<8x128xf32>,
    } else {
    }
    %c0_i32_3 = arith.constant 0 : i32
    %8 = arith.cmpi eq, %arg1, %c0_i32_3 : i32
    %9 = arith.extui %8 : i1 to i32
    %c0_i32_4 = arith.constant 0 : i32
    %10 = arith.cmpi ne, %9, %c0_i32_4 : i32
    scf.if %10 {
      %c0 = arith.constant 0 : index
      %c0_5 = arith.constant 0 : index
      %11 = vector.load %arg7[%c0, %c0_5] : memref<8x128xf32, #tpu.memory_space<vmem>>, vector<8x128xf32>
      %c0_6 = arith.constant 0 : index
      %c0_7 = arith.constant 0 : index
      %c0_8 = arith.constant 0 : index
      %12 = vector.load %arg6[%c0_6, %c0_7, %c0_8] : memref<1x8x128xf32, #tpu.memory_space<vmem>>, vector<1x8x128xf32>
      %13 = vector.shape_cast %12 : vector<1x8x128xf32> to vector<8x128xf32>
      %14 = vector.shape_cast %11 : vector<8x128xf32> to vector<1x8x128xf32>
      tpu.vector_store %arg6[%c0_6, %c0_7, %c0_8], %14 {strides = array<i32>} : memref<1x8x128xf32, #tpu.memory_space<vmem>>, vector<1x8x128xf32>,
    } else {
    }
    return
  }
  func.func @transform_0(%arg0: i32, %arg1: i32) -> (i32, i32) {
    %c1_i32 = arith.constant 1 : i32
    %0 = arith.muli %arg0, %c1_i32 : i32
    %1 = arith.addi %0, %arg1 : i32
    %c0_i32 = arith.constant 0 : i32
    %2 = arith.minsi %1, %c0_i32 : i32
    %c0_i32_0 = arith.constant 0 : i32
    %c0_i32_1 = arith.constant 0 : i32
    return %2, %c0_i32_0 : i32, i32
  }
  func.func @transform_1(%arg0: i32, %arg1: i32) -> (i32, i32) {
    %c1_i32 = arith.constant 1 : i32
    %0 = arith.muli %arg0, %c1_i32 : i32
    %1 = arith.addi %0, %arg1 : i32
    %c0_i32 = arith.constant 0 : i32
    %2 = arith.minsi %1, %c0_i32 : i32
    %c0_i32_0 = arith.constant 0 : i32
    %c0_i32_1 = arith.constant 0 : i32
    return %2, %c0_i32_0 : i32, i32
  }
  func.func @transform_2(%arg0: i32, %arg1: i32) -> (i32, i32) {
    %c1_i32 = arith.constant 1 : i32
    %0 = arith.muli %arg0, %c1_i32 : i32
    %1 = arith.addi %0, %arg1 : i32
    %c0_i32 = arith.constant 0 : i32
    %2 = arith.minsi %1, %c0_i32 : i32
    %c0_i32_0 = arith.constant 0 : i32
    %c0_i32_1 = arith.constant 0 : i32
    return %2, %c0_i32_0 : i32, i32
  }
  func.func @transform_3(%arg0: i32, %arg1: i32) -> (i32, i32) {
    %c1_i32 = arith.constant 1 : i32
    %0 = arith.muli %arg0, %c1_i32 : i32
    %1 = arith.addi %0, %arg1 : i32
    %c0_i32 = arith.constant 0 : i32
    %2 = arith.minsi %1, %c0_i32 : i32
    %c0_i32_0 = arith.constant 0 : i32
    %c0_i32_1 = arith.constant 0 : i32
    return %2, %c0_i32_0 : i32, i32
  }
  func.func @transform_4(%arg0: i32, %arg1: i32) -> (i32, i32, i32) {
    %c0_i32 = arith.constant 0 : i32
    %c0_i32_0 = arith.constant 0 : i32
    %c0_i32_1 = arith.constant 0 : i32
    return %arg0, %c0_i32, %c0_i32_0 : i32, i32, i32
  }
}

</mosaic_0001>

<bundles_post_ra>
// kernel: tpu_custom_call.1
= control target key start
LH: loop header
LB: loop body
LE: loop exit
PB: predicated region body
PF: predicated region fallthrough
CT: control target
= control target key end

     0   :  { %9 = vsyncpa [#allocation4], 0  ;;  %s688_s0 = inlined_call_operand.hbm [shape: f32[16,128], index: 0, kind: input, shape index: {}]   ;;  %s689_s1 = inlined_call_operand.hbm [shape: f32[16,128], index: 1, kind: input, shape index: {}]   ;;  %s690_s2 = inlined_call_operand.hbm [shape: f32[16,128], index: 2, kind: input, shape index: {}]   ;;  %s691_s3 = inlined_call_operand.hbm [shape: f32[16,128], index: 3, kind: input, shape index: {}]   ;;  %s692_s4 = inlined_call_operand.hbm [shape: f32[1,8,128], index: 4, kind: output, shape index: {}]  }
   0x1   :  { %10 = vsyncpa [#allocation7], 0 }
   0x2   :  { %11 = vsyncpa [#allocation10], 0 }
   0x3   :  { %12 = vsyncpa [#allocation5], 0  ;;  %s488_s15 = smov [#allocation6]   ;;  %s489_s17 = smov [#allocation3]  }
   0x4   :  { %s42_s16 = sshll.u32 %s488_s15, 4  ;;  %s24_s18 = sshll.u32 %s489_s17, 4  ;;  %s43_s16 = int_to_ptr.vmem [resolvable:$true] %s42_s16  ;;  %s520_s18 = int_to_ptr.vmem [resolvable:$true] %s24_s18 }
   0x5   :  { %s370_s21 = scalar_lea.hbm %s689_s1, 256 }
   0x6   :  { %p371_p0 = scmp.ne.s32.totalorder %s689_s1, %s370_s21  ;;  %p374_p1 = scmp.lt.u32.totalorder %s370_s21, %s689_s1 }
   0x8   :  { %p376_p2 = pnand %p374_p1, %p371_p0 }
   0xa   :  { %379 = shalt.err (!%p376_p2)
}
   0xb   :  { %s380_s26 = scalar_lea.vmem %s43_s16, 256  ;;  %p385_p4 = scmp.lt.s32.totalorder %s43_s16, %s43_s16 }
   0xc   :  { %p381_p3 = scmp.ne.s32.totalorder %s43_s16, %s380_s26  ;;  %p386_p5 = scmp.lt.s32.totalorder %s380_s26, %s380_s26 }
   0xe   :  { %p387_p6 = por %p386_p5, %p385_p4 }
  0x10   :  { %p388_p7 = pnand %p387_p6, %p381_p3 }
  0x12   :  { %391 = shalt.err (!%p388_p7)
}
  0x13   :  { %s490_s27 = smov 128   ;;  %s491_s28 = smov 8  }
  0x14   :  { %48 = dma.hbm_to_vmem [thread:$0]  %s689_s1, 256, %s43_s16, [#allocation7], %s490_s27, %s490_s27, %s491_s28  }
  0x15   :  { %s392_s7 = scalar_lea.hbm %s688_s0, 256 }
  0x16   :  { %p393_p8 = scmp.ne.s32.totalorder %s688_s0, %s392_s7  ;;  %p396_p9 = scmp.lt.u32.totalorder %s392_s7, %s688_s0 }
  0x18   :  { %p398_p10 = pnand %p396_p9, %p393_p8 }
  0x1a   :  { %401 = shalt.err (!%p398_p10)
}
  0x1b   :  { %s402_s12 = scalar_lea.vmem %s520_s18, 256  ;;  %p407_p12 = scmp.lt.s32.totalorder %s520_s18, %s520_s18 }
  0x1c   :  { %p403_p11 = scmp.ne.s32.totalorder %s520_s18, %s402_s12  ;;  %p408_p13 = scmp.lt.s32.totalorder %s402_s12, %s402_s12 }
  0x1e   :  { %p409_p0 = por %p408_p13, %p407_p12 }
  0x20   :  { %p410_p1 = pnand %p409_p0, %p403_p11 }
  0x22   :  { %413 = shalt.err (!%p410_p1)
}
  0x23   :  { %30 = dma.hbm_to_vmem [thread:$0]  %s688_s0, 256, %s520_s18, [#allocation4], %s490_s27, %s490_s27, %s491_s28  }
  0x24   :  { %s492_s14 = smov [#allocation8]   ;;  %s493_s16 = smov [#allocation9]  }
  0x25   :  { %s60_s15 = sshll.u32 %s492_s14, 4  ;;  %s78_s17 = sshll.u32 %s493_s16, 4  ;;  %s61_s15 = int_to_ptr.vmem [resolvable:$true] %s60_s15  ;;  %s557_s17 = int_to_ptr.vmem [resolvable:$true] %s78_s17 }
  0x26   :  { %s414_s21 = scalar_lea.hbm %s690_s2, 256 }
  0x27   :  { %p415_p2 = scmp.ne.s32.totalorder %s690_s2, %s414_s21  ;;  %p418_p3 = scmp.lt.u32.totalorder %s414_s21, %s690_s2 }
  0x29   :  { %p420_p4 = pnand %p418_p3, %p415_p2 }
  0x2b   :  { %423 = shalt.err (!%p420_p4)
}
  0x2c   :  { %s424_s0 = scalar_lea.vmem %s61_s15, 256  ;;  %p429_p6 = scmp.lt.s32.totalorder %s61_s15, %s61_s15 }
  0x2d   :  { %p425_p5 = scmp.ne.s32.totalorder %s61_s15, %s424_s0  ;;  %p430_p7 = scmp.lt.s32.totalorder %s424_s0, %s424_s0 }
  0x2f   :  { %p431_p8 = por %p430_p7, %p429_p6 }
  0x31   :  { %p432_p9 = pnand %p431_p8, %p425_p5 }
  0x33   :  { %435 = shalt.err (!%p432_p9)
}
  0x34   :  { %66 = dma.hbm_to_vmem [thread:$0]  %s690_s2, 256, %s61_s15, [#allocation7], %s490_s27, %s490_s27, %s491_s28  }
  0x35   :  { %s436_s5 = scalar_lea.hbm %s691_s3, 256 }
  0x36   :  { %p437_p10 = scmp.ne.s32.totalorder %s691_s3, %s436_s5  ;;  %p440_p11 = scmp.lt.u32.totalorder %s436_s5, %s691_s3 }
  0x38   :  { %p442_p12 = pnand %p440_p11, %p437_p10 }
  0x3a   :  { %445 = shalt.err (!%p442_p12)
}
  0x3b   :  { %s446_s10 = scalar_lea.vmem %s557_s17, 256  ;;  %p451_p0 = scmp.lt.s32.totalorder %s557_s17, %s557_s17 }
  0x3c   :  { %p447_p13 = scmp.ne.s32.totalorder %s557_s17, %s446_s10  ;;  %p452_p1 = scmp.lt.s32.totalorder %s446_s10, %s446_s10 }
  0x3e   :  { %p453_p2 = por %p452_p1, %p451_p0 }
  0x40   :  { %p454_p3 = pnand %p453_p2, %p447_p13 }
  0x42   :  { %457 = shalt.err (!%p454_p3)
}
  0x43   :  { %84 = dma.hbm_to_vmem [thread:$0]  %s691_s3, 256, %s557_s17, [#allocation10], %s490_s27, %s490_s27, %s491_s28  }
  0x44   :  { %480 = dma.done.wait [#allocation4], 256  }
  0x45   :  { %481 = vsyncadd [#allocation4], 4294967040 }
  0x46   :  { %482 = dma.done.wait [#allocation7], 512  }
  0x47   :  { %483 = vsyncadd [#allocation7], 4294966784 }
  0x48   :  { %484 = dma.done.wait [#allocation10], 256  }
  0x49   :  { %485 = vsyncadd [#allocation10], 4294967040  ;;  %v594_v0 = vld [vmem:[#allocation3] sm:$0xff]  ;;  %v599_v2 = vld [vmem:[#allocation3 + $0x8] sm:$0xff]  ;;  %s494_s3 = smov [#allocation11]  }
  0x4a   :  { %v597_v1 = vmul.f32 0.5, %v594_v0  ;;  %v608_v5 = vmul.f32 0.5, %v599_v2  ;;  %v125_v45 = vld [vmem:[#allocation8] sm:$0xff]  ;;  %s318_s27 = sshll.u32 %s494_s3, 4  ;;  %s319_s27 = int_to_ptr.vmem [resolvable:$true] %s318_s27 }
  0x4b   :  { %v128_v54 = vmul.f32 %v125_v45, %v125_v45  ;;  %s458_s28 = scalar_lea.vmem %s319_s27, 128  ;;  %p463_p5 = scmp.lt.s32.totalorder %s319_s27, %s319_s27 }
  0x4c   :  { %v602_v3 = vadd.f32 -0.5, %v597_v1  ;;  %v605_v4 = vadd.f32 -0.999999, %v597_v1  ;;  %v619_v14 = vadd.f32 -0.5, %v608_v5  ;;  %v622_v19 = vadd.f32 -0.999999, %v608_v5  ;;  %p459_p4 = scmp.ne.s32.totalorder %s319_s27, %s458_s28  ;;  %p464_p6 = scmp.lt.s32.totalorder %s458_s28, %s458_s28 }
  0x4e   :  { %v136_v6 = vadd.f32 33.458332, %v602_v3  ;;  %v147_v7 = vadd.f32 21.0, %v602_v3  ;;  %v169_v8 = vadd.f32 21.0, %v605_v4  ;;  %v158_v9 = vadd.f32 33.458332, %v605_v4  ;;  %p465_p7 = por %p464_p6, %p463_p5 }
  0x4f   :  { %v237_v23 = vadd.f32 21.0, %v619_v14  ;;  %v248_v26 = vadd.f32 33.458332, %v622_v19  ;;  %v226_v28 = vadd.f32 33.458332, %v619_v14  ;;  %v259_v41 = vadd.f32 21.0, %v622_v19 }
  0x50   :  { %v137_v10 = vmul.f32 %v602_v3, %v136_v6  ;;  %v148_v11 = vmul.f32 %v602_v3, %v147_v7  ;;  %v170_v12 = vmul.f32 %v169_v8, %v605_v4  ;;  %v159_v13 = vmul.f32 %v158_v9, %v605_v4  ;;  %v215_v6 = vld [vmem:[#allocation8 + $0x8] sm:$0xff]  ;;  %p466_p8 = pnand %p465_p7, %p459_p4 }
  0x51   :  { %v238_v29 = vmul.f32 %v619_v14, %v237_v23  ;;  %v249_v36 = vmul.f32 %v248_v26, %v622_v19  ;;  %v227_v38 = vmul.f32 %v619_v14, %v226_v28  ;;  %v260_v53 = vmul.f32 %v259_v41, %v622_v19 }
  0x52   :  { %v138_v15 = vadd.f32 466.3342, %v137_v10  ;;  %v149_v16 = vadd.f32 175.0, %v148_v11  ;;  %v171_v17 = vadd.f32 175.0, %v170_v12  ;;  %v160_v18 = vadd.f32 466.3342, %v159_v13 }
  0x53   :  { %v239_v33 = vadd.f32 175.0, %v238_v29  ;;  %v250_v48 = vadd.f32 466.3342, %v249_v36  ;;  %v228_v50 = vadd.f32 466.3342, %v227_v38  ;;  %v261_v8 = vadd.f32 175.0, %v260_v53 }
  0x54   :  { %v150_v20 = vmul.f32 %v602_v3, %v149_v16  ;;  %v161_v21 = vmul.f32 %v160_v18, %v605_v4  ;;  %v172_v22 = vmul.f32 %v171_v17, %v605_v4  ;;  %v139_v24 = vmul.f32 %v602_v3, %v138_v15 }
  0x55   :  { %v240_v39 = vmul.f32 %v619_v14, %v239_v33  ;;  %v251_v60 = vmul.f32 %v250_v48, %v622_v19  ;;  %v229_v62 = vmul.f32 %v619_v14, %v228_v50  ;;  %v129_v9 = vmul.f32 %v128_v54, %v594_v0  ;;  %v214_v48 = vld [vmem:[#allocation6 + $0x8] sm:$0xff] }
  0x56   :  { %v151_v25 = vadd.f32 735.0, %v150_v20  ;;  %v162_v27 = vadd.f32 3465.7095, %v161_v21  ;;  %v173_v32 = vadd.f32 735.0, %v172_v22  ;;  %v140_v34 = vadd.f32 3465.7095, %v139_v24 }
  0x57   :  { %v241_v44 = vadd.f32 735.0, %v240_v39  ;;  %v252_v7 = vadd.f32 3465.7095, %v251_v60  ;;  %v262_v15 = vmul.f32 %v261_v8, %v622_v19  ;;  %v218_v16 = vmul.f32 %v215_v6, %v215_v6 }
  0x58   :  { %v152_v30 = vmul.f32 %v602_v3, %v151_v25  ;;  %v163_v31 = vmul.f32 %v162_v27, %v605_v4  ;;  %v174_v43 = vmul.f32 %v173_v32, %v605_v4  ;;  %v141_v46 = vmul.f32 %v602_v3, %v140_v34  ;;  %v126_v32 = vld [vmem:[#allocation9] sm:$0xff] }
  0x59   :  { %v242_v51 = vmul.f32 %v619_v14, %v241_v44  ;;  %v253_v13 = vmul.f32 %v252_v7, %v622_v19  ;;  %v230_v17 = vadd.f32 3465.7095, %v229_v62  ;;  %v263_v21 = vadd.f32 735.0, %v262_v15 }
  0x5a   :  { %v153_v35 = vadd.f32 1624.0, %v152_v30  ;;  %v164_v37 = vadd.f32 14484.914, %v163_v31  ;;  %v175_v56 = vadd.f32 1624.0, %v174_v43  ;;  %v142_v58 = vadd.f32 14484.914, %v141_v46 }
  0x5b   :  { %v243_v57 = vadd.f32 1624.0, %v242_v51  ;;  %v254_v20 = vadd.f32 14484.914, %v253_v13  ;;  %v130_v22 = vadd.f32 1e-06, %v129_v9  ;;  %v134_v23 = vadd.f32 5.0, %v597_v1 }
  0x5c   :  { %v154_v40 = vmul.f32 %v602_v3, %v153_v35  ;;  %v165_v42 = vmul.f32 %v164_v37, %v605_v4  ;;  %v176_v10 = vmul.f32 %v175_v56, %v605_v4  ;;  %v143_v12 = vmul.f32 %v602_v3, %v142_v58  ;;  %v124_v31 = vld [vmem:[#allocation6] sm:$0xff] }
  0x5d   :  { %v244_v63 = vmul.f32 %v619_v14, %v243_v57  ;;  %v255_v26 = vmul.f32 %v254_v20, %v622_v19  ;;  %v264_v27 = vmul.f32 %v263_v21, %v622_v19  ;;  %v219_v28 = vmul.f32 %v218_v16, %v599_v2 }
  0x5e   :  { %v155_v47 = vadd.f32 1764.0, %v154_v40  ;;  %v166_v49 = vadd.f32 32281.064, %v165_v42  ;;  %v177_v0 = vadd.f32 1764.0, %v176_v10  ;;  %v144_v25 = vadd.f32 32281.064, %v143_v12 }
  0x5f   :  { %v245_v11 = vadd.f32 1764.0, %v244_v63  ;;  %v231_v29 = vmul.f32 %v619_v14, %v230_v17  ;;  %v256_v30 = vadd.f32 32281.064, %v255_v26  ;;  %v191_v34 = vmul.f32 %v134_v23, %v130_v22 }
  0x60   :  { %v156_v52 = vmul.f32 %v602_v3, %v155_v47  ;;  %v167_v55 = vmul.f32 %v166_v49, %v605_v4  ;;  %v178_v33 = vmul.f32 %v177_v0, %v605_v4  ;;  %v265_v35 = vadd.f32 1624.0, %v264_v27  ;;  %v216_v49 = vld [vmem:[#allocation9 + $0x8] sm:$0xff] }
  0x61   :  { %v246_v18 = vmul.f32 %v619_v14, %v245_v11  ;;  %v145_v37 = vmul.f32 %v602_v3, %v144_v25  ;;  %v257_v38 = vmul.f32 %v256_v30, %v622_v19  ;;  %v220_v41 = vadd.f32 1e-06, %v219_v28 }
  0x62   :  { %v157_v59 = vadd.f32 720.0, %v156_v52  ;;  %v168_v61 = vadd.f32 29969.594, %v167_v55  ;;  %v224_v2 = vadd.f32 5.0, %v608_v5  ;;  %v232_v42 = vadd.f32 14484.914, %v231_v29 }
  0x63   :  { %v247_v24 = vadd.f32 720.0, %v246_v18  ;;  %v131_v43 = vsub.f32 %v126_v32, %v124_v31  ;;  %v135_v44 = vadd.f32 4.500001, %v597_v1  ;;  %v258_v46 = vadd.f32 29969.594, %v257_v38 }
  0x64   :  { %346 = vrcp.f32 %v157_v59  ;;  %v179_v47 = vadd.f32 720.0, %v178_v33  ;;  %v266_v3 = vmul.f32 %v265_v35, %v622_v19  ;;  %v146_v50 = vadd.f32 29969.594, %v145_v37 }
  0x65   :  { %348 = vrcp.f32 %v168_v61  ;;  %v233_v53 = vmul.f32 %v619_v14, %v232_v42  ;;  %v281_v54 = vmul.f32 %v224_v2, %v220_v41  ;;  %v205_v56 = vmul.f32 %v131_v43, %v131_v43 }
  0x66   :  { %350 = vrcp.f32 %v247_v24  ;;  %v221_v57 = vsub.f32 %v216_v49, %v214_v48  ;;  %v267_v60 = vadd.f32 1764.0, %v266_v3  ;;  %v225_v63 = vadd.f32 4.500001, %v608_v5 }
  0x67   :  { %352 = vlog2.f32 %v191_v34  ;;  %v234_v6 = vadd.f32 32281.064, %v233_v53  ;;  %v206_v7 = vadd.f32 %v205_v56, %v130_v22  ;;  %v286_v37 = vadd.f32 -0.499999, %v608_v5 }
  0x68   :  { %354 = vrcp.f32 %v258_v46  ;;  %v295_v8 = vmul.f32 %v221_v57, %v221_v57  ;;  %v268_v10 = vmul.f32 %v267_v60, %v622_v19 }
  0x69   :  { %356 = vlog2.f32 %v135_v44  ;;  %v235_v13 = vmul.f32 %v619_v14, %v234_v6  ;;  %v196_v14 = vadd.f32 -0.499999, %v597_v1 }
  0x6a   :  { %358 = vlog2.f32 %v281_v54  ;;  %v296_v16 = vadd.f32 %v295_v8, %v220_v41  ;;  %v269_v17 = vadd.f32 720.0, %v268_v10  ;;  %v204_v41 = vadd.f32 0.5, %v597_v1 }
  0x6b   :  { %360 = vlog2.f32 %v225_v63  ;;  %v236_v0 = vadd.f32 29969.594, %v235_v13 }
  0x6c   :  { %362 = vlog2.f32 %v206_v7 }
  0x6e   :  { %v347_v36 = vpop.eup %346 }
  0x6f   :  { %v349_v39 = vpop.eup %348  ;;  %v186_v40 = vmul.f32 %v347_v36, %v157_v59 }
  0x70   :  { %v181_v45 = vmul.f32 %v349_v39, %v168_v61  ;;  %v351_v58 = vpop.eup %350 }
  0x71   :  { %v187_v4 = vsub.f32 2.0, %v186_v40  ;;  %v276_v62 = vmul.f32 %v351_v58, %v247_v24  ;;  %v353_v12 = vpop.eup %352 }
  0x72   :  { %v182_v51 = vsub.f32 2.0, %v181_v45  ;;  %v355_v15 = vpop.eup %354  ;;  %v193_v21 = vmul.f32 0.6931472, %v353_v12 }
  0x73   :  { %v188_v52 = vmul.f32 %v347_v36, %v187_v4  ;;  %v277_v11 = vsub.f32 2.0, %v276_v62  ;;  %v271_v18 = vmul.f32 %v355_v15, %v258_v46  ;;  %v357_v23 = vpop.eup %356 }
  0x74   :  { %v183_v55 = vmul.f32 %v349_v39, %v182_v51  ;;  %v359_v24 = vpop.eup %358  ;;  %v194_v19 = vmul.f32 %v193_v21, %v597_v1  ;;  %v198_v27 = vmul.f32 0.6931472, %v357_v23 }
  0x75   :  { %v189_v59 = vmul.f32 %v188_v52, %v179_v47  ;;  %v278_v20 = vmul.f32 %v351_v58, %v277_v11  ;;  %v272_v22 = vsub.f32 2.0, %v271_v18  ;;  %v283_v29 = vmul.f32 0.6931472, %v359_v24  ;;  %v361_v30 = vpop.eup %360 }
  0x76   :  { %v184_v61 = vmul.f32 %v183_v55, %v146_v50  ;;  %v363_v32 = vpop.eup %362  ;;  %v195_v33 = vadd.f32 -1.072364, %v194_v19  ;;  %v199_v34 = vmul.f32 %v198_v27, %v196_v14  ;;  %v288_v38 = vmul.f32 0.6931472, %v361_v30 }
  0x77   :  { %v273_v25 = vmul.f32 %v355_v15, %v272_v22  ;;  %v279_v26 = vmul.f32 %v278_v20, %v269_v17  ;;  %v284_v36 = vmul.f32 %v283_v29, %v608_v5  ;;  %v208_v2 = vmul.f32 0.6931472, %v363_v32 }
  0x78   :  { %v190_v9 = vmul.f32 %v189_v59, %v184_v61  ;;  %v200_v39 = vsub.f32 %v195_v33, %v199_v34  ;;  %v289_v44 = vmul.f32 %v288_v38, %v286_v37  ;;  %v294_v47 = vadd.f32 0.5, %v608_v5 }
  0x79   :  { %v274_v28 = vmul.f32 %v273_v25, %v236_v0  ;;  %v285_v43 = vadd.f32 -1.072364, %v284_v36  ;;  %v209_v46 = vmul.f32 %v208_v2, %v204_v41 }
  0x7a   :  { %364 = vlog2.f32 %v190_v9 }
  0x7b   :  { %366 = vlog2.f32 %v296_v16  ;;  %v280_v31 = vmul.f32 %v279_v26, %v274_v28  ;;  %v290_v48 = vsub.f32 %v285_v43, %v289_v44 }
  0x7d   :  { %368 = vlog2.f32 %v280_v31 }
  0x84   :  { %v365_v35 = vpop.eup %364 }
  0x85   :  { %v202_v40 = vmul.f32 0.6931472, %v365_v35  ;;  %v367_v42 = vpop.eup %366 }
  0x86   :  { %v298_v4 = vmul.f32 0.6931472, %v367_v42 }
  0x87   :  { %v203_v45 = vadd.f32 %v202_v40, %v200_v39  ;;  %v369_v49 = vpop.eup %368 }
  0x88   :  { %v292_v50 = vmul.f32 0.6931472, %v369_v49  ;;  %v299_v51 = vmul.f32 %v298_v4, %v294_v47 }
  0x89   :  { %v210_v3 = vsub.f32 %v203_v45, %v209_v46 }
  0x8a   :  { %v293_v52 = vadd.f32 %v292_v50, %v290_v48 }
  0x8b   :  { %v211_v53 = vsub.f32 0.0, %v210_v3 }
  0x8c   :  { %v300_v54 = vsub.f32 %v293_v52, %v299_v51 }
  0x8e   :  { %v301_v1 = vsub.f32 0.0, %v300_v54 }
  0x90   :  { %v303_v55 = vadd.f32 %v301_v1, %v211_v53 }
  0x92   :  { %311 = vst [vmem:[#allocation11] sm:$0xff] %v303_v55 }
  0x93   :  { %469 = shalt.err (!%p466_p8)
}
  0x94   :  { %s470_s13 = scalar_lea.hbm %s692_s4, 128 }
  0x95   :  { %p471_p9 = scmp.ne.s32.totalorder %s692_s4, %s470_s13  ;;  %p474_p10 = scmp.lt.u32.totalorder %s470_s13, %s692_s4 }
  0x97   :  { %p476_p11 = pnand %p474_p10, %p471_p9 }
  0x99   :  { %479 = shalt.err (!%p476_p11)
}
  0x9a   :  { %321 = dma.vmem_to_hbm [thread:$0]  %s319_s27, 128, %s692_s4, [#allocation5]  }
  0x9b   :  { %486 = dma.done.wait [#allocation5], 128  }
  0x9c   :  { %487 = vsyncadd [#allocation5], 4294967168 }
  0x9d   :  { %325 = vsyncpa [#allocation4], 1 }
  0x9e   :  { %326 = vsyncpa [#allocation7], 1 }
  0x9f   :  { %327 = vsyncpa [#allocation10], 1 }
  0xa0   :  { %328 = vsyncpa [#allocation5], 1 }

</bundles_post_ra>
